<compile_context>
chip_gen: v7x
topology: tpu7x:2x2x1
jax: 0.10.0
libtpu: 0.0.40
codegen_flags: <defaults>
</compile_context>

<pallas_src>
import math
from functools import partial

import jax
import jax.numpy as jnp
from jax import lax
from jax.experimental import pallas as pl
from jax.experimental.pallas import tpu as pltpu


def _round_up(x, m):
    return (x + m - 1) // m * m


def _attn_kernel(q_ref, k_ref, v_ref, bias_ref,
                 wq_ref, bq_ref, wk_ref, bk_ref, wv_ref, bv_ref,
                 o_ref, *, batch, t_len, s_len, inv_sqrt_dk):
    # q_ref: (B*T, D)  k_ref/v_ref: (B*S, D)  bias_ref: (B, S)
    # weights: (D, Opad)  biases: (1, Opad)  o_ref: (B, T, Opad)

    # Folded-batch projections: one big MXU matmul per projection.
    Q = jnp.dot(q_ref[...], wq_ref[...], preferred_element_type=jnp.float32) + bq_ref[...]
    K = jnp.dot(k_ref[...], wk_ref[...], preferred_element_type=jnp.float32) + bk_ref[...]
    V = jnp.dot(v_ref[...], wv_ref[...], preferred_element_type=jnp.float32) + bv_ref[...]

    bias = bias_ref[...]                      # (B, S) additive mask (0 / -1e30)
    scale = jnp.float32(inv_sqrt_dk)

    # Per-batch attention (static unroll; B is small). Score / PV matmuls stay
    # per-batch; contraction on the feature axis avoids materializing K.T.
    for b in range(batch):
        Qb = Q[b * t_len:(b + 1) * t_len, :]   # (T, Opad)
        Kb = K[b * s_len:(b + 1) * s_len, :]   # (S, Opad)
        Vb = V[b * s_len:(b + 1) * s_len, :]   # (S, Opad)

        s = lax.dot_general(
            Qb, Kb,
            dimension_numbers=(((1,), (1,)), ((), ())),
            preferred_element_type=jnp.float32)          # (T, S)
        # floor-division scaling, as in the PyTorch code (// sqrt(dim_k))
        s = jnp.floor(s * scale)
        # additive key-padding mask, (1, S) broadcast over (T, S)
        s = s + bias[b:b + 1, :]

        # softmax over the key axis
        m = jnp.max(s, axis=-1, keepdims=True)
        e = jnp.exp(s - m)
        w = e * pl.reciprocal(jnp.sum(e, axis=-1, keepdims=True), approx=False)

        o_ref[b] = jnp.dot(w, Vb, preferred_element_type=jnp.float32).astype(o_ref.dtype)


def self_attention(q, k, v, mask, params):
    """q: (B, T, D), k/v: (B, S, D), mask: (B, S) (nonzero = keep)."""
    B, T, D = q.shape
    S = k.shape[1]
    wq, bq, wk, bk, wv, bv = params
    O = wq.shape[1]
    Opad = _round_up(O, 128)        # lane-dense output / weight layout

    def pad_w(w):
        return jnp.pad(w, ((0, 0), (0, Opad - O))) if Opad != O else w

    def pad_b(b):
        b = jnp.pad(b, (0, Opad - O)) if Opad != O else b
        return b.reshape(1, Opad)

    # Fold batch into the leading (M) dim for the projections.
    q2 = q.reshape(B * T, D)
    k2 = k.reshape(B * S, D)
    v2 = v.reshape(B * S, D)

    # Additive mask bias: 0 where kept, -1e30 where masked out.
    bias = jnp.where(mask == 0, jnp.float32(-1e30), jnp.float32(0.0))

    kernel = partial(_attn_kernel, batch=B, t_len=T, s_len=S,
                     inv_sqrt_dk=1.0 / math.sqrt(O))

    def full(shape):
        return pl.BlockSpec(shape, lambda i, _s=shape: (0,) * len(_s))

    out_pad = pl.pallas_call(
        kernel,
        out_shape=jax.ShapeDtypeStruct((B, T, Opad), jnp.float32),
        grid_spec=pltpu.PrefetchScalarGridSpec(
            num_scalar_prefetch=0,
            grid=(1,),                              # single step: nothing to pipeline at these sizes
            in_specs=[full((B * T, D)), full((B * S, D)), full((B * S, D)),
                      full((B, S)),
                      full((D, Opad)), full((1, Opad)),
                      full((D, Opad)), full((1, Opad)),
                      full((D, Opad)), full((1, Opad))],
            out_specs=full((B, T, Opad)),
        ),
        compiler_params=pltpu.CompilerParams(
            dimension_semantics=("arbitrary",)),
    )(q2, k2, v2, bias,
      pad_w(wq), pad_b(bq), pad_w(wk), pad_b(bk), pad_w(wv), pad_b(bv))

    return out_pad[..., :O]


def init_params(key, d_model, output_size):
    """Deterministic init mimicking nn.Linear's uniform(-1/sqrt(in), 1/sqrt(in)).
    Weights are returned already transposed to (d_model, output_size)."""
    bound = 1.0 / math.sqrt(d_model)
    keys = jax.random.split(key, 6)
    wq = jax.random.uniform(keys[0], (d_model, output_size), jnp.float32, -bound, bound)
    bq = jax.random.uniform(keys[1], (output_size,), jnp.float32, -bound, bound)
    wk = jax.random.uniform(keys[2], (d_model, output_size), jnp.float32, -bound, bound)
    bk = jax.random.uniform(keys[3], (output_size,), jnp.float32, -bound, bound)
    wv = jax.random.uniform(keys[4], (d_model, output_size), jnp.float32, -bound, bound)
    bv = jax.random.uniform(keys[5], (output_size,), jnp.float32, -bound, bound)
    return (wq, bq, wk, bk, wv, bv)


def reference(q, k, v, mask, params):
    """Pure-JAX reference of the PyTorch forward (floor-division scaling)."""
    wq, bq, wk, bk, wv, bv = params
    Q = q @ wq + bq
    K = k @ wk + bk
    V = v @ wv + bv
    dk = K.shape[-1]
    scores = jnp.floor(jnp.einsum('btd,bsd->bts', Q, K) / math.sqrt(dk))
    scores = jnp.where(mask[:, None, :] == 0, -jnp.inf, scores)
    w = jax.nn.softmax(scores, axis=-1)
    return jnp.einsum('bts,bsd->btd', w, V)


if __name__ == "__main__":
    B, T, S, D_MODEL, OUT = 2, 8, 8, 32, 32

    key = jax.random.PRNGKey(0)
    kq, kk, kv, kp = jax.random.split(key, 4)
    q = jax.random.normal(kq, (B, T, D_MODEL), jnp.float32)
    k = jax.random.normal(kk, (B, S, D_MODEL), jnp.float32)
    v = jax.random.normal(kv, (B, S, D_MODEL), jnp.float32)

    # Key-padding mask: keep all but the last two key positions.
    mask = jnp.ones((B, S), jnp.float32).at[:, -2:].set(0.0)

    params = init_params(kp, D_MODEL, OUT)

    out = self_attention(q, k, v, mask, params)
    out = jax.block_until_ready(out)

    ref = reference(q, k, v, mask, params)
    assert out.shape == (B, T, OUT)
    assert jnp.allclose(out, ref, atol=1e-5, rtol=1e-5), "mismatch vs reference"

    print("KERNEL_OK")
</pallas_src>

<mosaic_0001>
module attributes {stable_mosaic.version = 11 : i64} {
  func.func @_attn_kernel(%arg0: i32, %arg1: memref<16x32xf32, #tpu.memory_space<vmem>>, %arg2: memref<16x32xf32, #tpu.memory_space<vmem>>, %arg3: memref<16x32xf32, #tpu.memory_space<vmem>>, %arg4: memref<2x8xf32, #tpu.memory_space<vmem>>, %arg5: memref<32x128xf32, #tpu.memory_space<vmem>>, %arg6: memref<1x128xf32, #tpu.memory_space<vmem>>, %arg7: memref<32x128xf32, #tpu.memory_space<vmem>>, %arg8: memref<1x128xf32, #tpu.memory_space<vmem>>, %arg9: memref<32x128xf32, #tpu.memory_space<vmem>>, %arg10: memref<1x128xf32, #tpu.memory_space<vmem>>, %arg11: memref<2x8x128xf32, #tpu.memory_space<vmem>>) attributes {dimension_semantics = [#tpu.dimension_semantics<arbitrary>], iteration_bounds = array<i64: 1>, scalar_prefetch = 0 : i64, scratch_operands = 0 : i64, tpu.core_type = #tpu.core_type<tc>, window_params = [{pipeline_mode = #tpu.pipeline_mode<synchronous>, transform_indices = @transform_0, window_bounds = array<i64: 16, 32>}, {pipeline_mode = #tpu.pipeline_mode<synchronous>, transform_indices = @transform_1, window_bounds = array<i64: 16, 32>}, {pipeline_mode = #tpu.pipeline_mode<synchronous>, transform_indices = @transform_2, window_bounds = array<i64: 16, 32>}, {pipeline_mode = #tpu.pipeline_mode<synchronous>, transform_indices = @transform_3, window_bounds = array<i64: 2, 8>}, {pipeline_mode = #tpu.pipeline_mode<synchronous>, transform_indices = @transform_4, window_bounds = array<i64: 32, 128>}, {pipeline_mode = #tpu.pipeline_mode<synchronous>, transform_indices = @transform_5, window_bounds = array<i64: 1, 128>}, {pipeline_mode = #tpu.pipeline_mode<synchronous>, transform_indices = @transform_6, window_bounds = array<i64: 32, 128>}, {pipeline_mode = #tpu.pipeline_mode<synchronous>, transform_indices = @transform_7, window_bounds = array<i64: 1, 128>}, {pipeline_mode = #tpu.pipeline_mode<synchronous>, transform_indices = @transform_8, window_bounds = array<i64: 32, 128>}, {pipeline_mode = #tpu.pipeline_mode<synchronous>, transform_indices = @transform_9, window_bounds = array<i64: 1, 128>}, {pipeline_mode = #tpu.pipeline_mode<synchronous>, transform_indices = @transform_10, window_bounds = array<i64: 2, 8, 128>}]} {
    %c0 = arith.constant 0 : index
    %c0_0 = arith.constant 0 : index
    %0 = vector.load %arg1[%c0, %c0_0] : memref<16x32xf32, #tpu.memory_space<vmem>>, vector<16x32xf32>
    %c0_1 = arith.constant 0 : index
    %c0_2 = arith.constant 0 : index
    %1 = vector.load %arg5[%c0_1, %c0_2] : memref<32x128xf32, #tpu.memory_space<vmem>>, vector<32x128xf32>
    %cst = arith.constant dense<0.000000e+00> : vector<16x128xf32>
    %2 = tpu.matmul %0, %1, %cst {dimension_numbers = #tpu.dot_dimension_numbers<[1], [0], [0], [1], [0, 0, 1, 1], [], []>} : vector<16x32xf32>, vector<32x128xf32>, vector<16x128xf32> -> vector<16x128xf32>
    %c0_3 = arith.constant 0 : index
    %c0_4 = arith.constant 0 : index
    %3 = vector.load %arg6[%c0_3, %c0_4] : memref<1x128xf32, #tpu.memory_space<vmem>>, vector<1x128xf32>
    %4 = vector.broadcast %3 : vector<1x128xf32> to vector<16x128xf32>
    %5 = arith.addf %2, %4 : vector<16x128xf32>
    %c0_5 = arith.constant 0 : index
    %c0_6 = arith.constant 0 : index
    %6 = vector.load %arg2[%c0_5, %c0_6] : memref<16x32xf32, #tpu.memory_space<vmem>>, vector<16x32xf32>
    %c0_7 = arith.constant 0 : index
    %c0_8 = arith.constant 0 : index
    %7 = vector.load %arg7[%c0_7, %c0_8] : memref<32x128xf32, #tpu.memory_space<vmem>>, vector<32x128xf32>
    %cst_9 = arith.constant dense<0.000000e+00> : vector<16x128xf32>
    %8 = tpu.matmul %6, %7, %cst_9 {dimension_numbers = #tpu.dot_dimension_numbers<[1], [0], [0], [1], [0, 0, 1, 1], [], []>} : vector<16x32xf32>, vector<32x128xf32>, vector<16x128xf32> -> vector<16x128xf32>
    %c0_10 = arith.constant 0 : index
    %c0_11 = arith.constant 0 : index
    %9 = vector.load %arg8[%c0_10, %c0_11] : memref<1x128xf32, #tpu.memory_space<vmem>>, vector<1x128xf32>
    %10 = vector.broadcast %9 : vector<1x128xf32> to vector<16x128xf32>
    %11 = arith.addf %8, %10 : vector<16x128xf32>
    %c0_12 = arith.constant 0 : index
    %c0_13 = arith.constant 0 : index
    %12 = vector.load %arg3[%c0_12, %c0_13] : memref<16x32xf32, #tpu.memory_space<vmem>>, vector<16x32xf32>
    %c0_14 = arith.constant 0 : index
    %c0_15 = arith.constant 0 : index
    %13 = vector.load %arg9[%c0_14, %c0_15] : memref<32x128xf32, #tpu.memory_space<vmem>>, vector<32x128xf32>
    %cst_16 = arith.constant dense<0.000000e+00> : vector<16x128xf32>
    %14 = tpu.matmul %12, %13, %cst_16 {dimension_numbers = #tpu.dot_dimension_numbers<[1], [0], [0], [1], [0, 0, 1, 1], [], []>} : vector<16x32xf32>, vector<32x128xf32>, vector<16x128xf32> -> vector<16x128xf32>
    %c0_17 = arith.constant 0 : index
    %c0_18 = arith.constant 0 : index
    %15 = vector.load %arg10[%c0_17, %c0_18] : memref<1x128xf32, #tpu.memory_space<vmem>>, vector<1x128xf32>
    %16 = vector.broadcast %15 : vector<1x128xf32> to vector<16x128xf32>
    %17 = arith.addf %14, %16 : vector<16x128xf32>
    %c0_19 = arith.constant 0 : index
    %c0_20 = arith.constant 0 : index
    %18 = vector.load %arg4[%c0_19, %c0_20] : memref<2x8xf32, #tpu.memory_space<vmem>>, vector<2x8xf32>
    %19 = vector.extract_strided_slice %5 {offsets = [0, 0], sizes = [8, 128], strides = [1, 1]} : vector<16x128xf32> to vector<8x128xf32>
    %20 = vector.extract_strided_slice %11 {offsets = [0, 0], sizes = [8, 128], strides = [1, 1]} : vector<16x128xf32> to vector<8x128xf32>
    %21 = vector.extract_strided_slice %17 {offsets = [0, 0], sizes = [8, 128], strides = [1, 1]} : vector<16x128xf32> to vector<8x128xf32>
    %cst_21 = arith.constant dense<0.000000e+00> : vector<8x8xf32>
    %22 = tpu.matmul %19, %20, %cst_21 {dimension_numbers = #tpu.dot_dimension_numbers<[1], [1], [0], [0], [0, 0, 1, 0], [], []>} : vector<8x128xf32>, vector<8x128xf32>, vector<8x8xf32> -> vector<8x8xf32>
    %cst_22 = arith.constant 0.176776692 : f32
    %23 = vector.broadcast %cst_22 : f32 to vector<8x8xf32>
    %24 = arith.mulf %22, %23 : vector<8x8xf32>
    %25 = math.floor %24 : vector<8x8xf32>
    %26 = vector.extract_strided_slice %18 {offsets = [0, 0], sizes = [1, 8], strides = [1, 1]} : vector<2x8xf32> to vector<1x8xf32>
    %27 = vector.broadcast %26 : vector<1x8xf32> to vector<8x8xf32>
    %28 = arith.addf %25, %27 : vector<8x8xf32>
    %cst_23 = arith.constant dense<0xFF800000> : vector<8xf32>
    %29 = vector.multi_reduction <maximumf>, %28, %cst_23 [1] : vector<8x8xf32> to vector<8xf32>
    %30 = vector.shape_cast %29 : vector<8xf32> to vector<8x1xf32>
    %31 = vector.broadcast %30 : vector<8x1xf32> to vector<8x8xf32>
    %32 = arith.subf %28, %31 : vector<8x8xf32>
    %33 = math.exp %32 : vector<8x8xf32>
    %cst_24 = arith.constant dense<0.000000e+00> : vector<8xf32>
    %34 = vector.multi_reduction <add>, %33, %cst_24 [1] : vector<8x8xf32> to vector<8xf32>
    %35 = vector.shape_cast %34 : vector<8xf32> to vector<8x1xf32>
    %36 = tpu.reciprocal %35 : vector<8x1xf32> -> vector<8x1xf32>
    %37 = vector.broadcast %36 : vector<8x1xf32> to vector<8x8xf32>
    %38 = arith.mulf %33, %37 : vector<8x8xf32>
    %cst_25 = arith.constant dense<0.000000e+00> : vector<8x128xf32>
    %39 = tpu.matmul %38, %21, %cst_25 {dimension_numbers = #tpu.dot_dimension_numbers<[1], [0], [0], [1], [0, 0, 1, 1], [], []>} : vector<8x8xf32>, vector<8x128xf32>, vector<8x128xf32> -> vector<8x128xf32>
    %c0_26 = arith.constant 0 : index
    %c0_27 = arith.constant 0 : index
    %c0_28 = arith.constant 0 : index
    %40 = vector.load %arg11[%c0_26, %c0_27, %c0_28] : memref<2x8x128xf32, #tpu.memory_space<vmem>>, vector<1x8x128xf32>
    %41 = vector.shape_cast %40 : vector<1x8x128xf32> to vector<8x128xf32>
    %42 = vector.shape_cast %39 : vector<8x128xf32> to vector<1x8x128xf32>
    tpu.vector_store %arg11[%c0_26, %c0_27, %c0_28], %42 {strides = array<i32>} : memref<2x8x128xf32, #tpu.memory_space<vmem>>, vector<1x8x128xf32>,
    %43 = vector.extract_strided_slice %5 {offsets = [8, 0], sizes = [8, 128], strides = [1, 1]} : vector<16x128xf32> to vector<8x128xf32>
    %44 = vector.extract_strided_slice %11 {offsets = [8, 0], sizes = [8, 128], strides = [1, 1]} : vector<16x128xf32> to vector<8x128xf32>
    %45 = vector.extract_strided_slice %17 {offsets = [8, 0], sizes = [8, 128], strides = [1, 1]} : vector<16x128xf32> to vector<8x128xf32>
    %cst_29 = arith.constant dense<0.000000e+00> : vector<8x8xf32>
    %46 = tpu.matmul %43, %44, %cst_29 {dimension_numbers = #tpu.dot_dimension_numbers<[1], [1], [0], [0], [0, 0, 1, 0], [], []>} : vector<8x128xf32>, vector<8x128xf32>, vector<8x8xf32> -> vector<8x8xf32>
    %cst_30 = arith.constant 0.176776692 : f32
    %47 = vector.broadcast %cst_30 : f32 to vector<8x8xf32>
    %48 = arith.mulf %46, %47 : vector<8x8xf32>
    %49 = math.floor %48 : vector<8x8xf32>
    %50 = vector.extract_strided_slice %18 {offsets = [1, 0], sizes = [1, 8], strides = [1, 1]} : vector<2x8xf32> to vector<1x8xf32>
    %51 = vector.broadcast %50 : vector<1x8xf32> to vector<8x8xf32>
    %52 = arith.addf %49, %51 : vector<8x8xf32>
    %cst_31 = arith.constant dense<0xFF800000> : vector<8xf32>
    %53 = vector.multi_reduction <maximumf>, %52, %cst_31 [1] : vector<8x8xf32> to vector<8xf32>
    %54 = vector.shape_cast %53 : vector<8xf32> to vector<8x1xf32>
    %55 = vector.broadcast %54 : vector<8x1xf32> to vector<8x8xf32>
    %56 = arith.subf %52, %55 : vector<8x8xf32>
    %57 = math.exp %56 : vector<8x8xf32>
    %cst_32 = arith.constant dense<0.000000e+00> : vector<8xf32>
    %58 = vector.multi_reduction <add>, %57, %cst_32 [1] : vector<8x8xf32> to vector<8xf32>
    %59 = vector.shape_cast %58 : vector<8xf32> to vector<8x1xf32>
    %60 = tpu.reciprocal %59 : vector<8x1xf32> -> vector<8x1xf32>
    %61 = vector.broadcast %60 : vector<8x1xf32> to vector<8x8xf32>
    %62 = arith.mulf %57, %61 : vector<8x8xf32>
    %cst_33 = arith.constant dense<0.000000e+00> : vector<8x128xf32>
    %63 = tpu.matmul %62, %45, %cst_33 {dimension_numbers = #tpu.dot_dimension_numbers<[1], [0], [0], [1], [0, 0, 1, 1], [], []>} : vector<8x8xf32>, vector<8x128xf32>, vector<8x128xf32> -> vector<8x128xf32>
    %c1 = arith.constant 1 : index
    %c0_34 = arith.constant 0 : index
    %c0_35 = arith.constant 0 : index
    %64 = vector.load %arg11[%c1, %c0_34, %c0_35] : memref<2x8x128xf32, #tpu.memory_space<vmem>>, vector<1x8x128xf32>
    %65 = vector.shape_cast %64 : vector<1x8x128xf32> to vector<8x128xf32>
    %66 = vector.shape_cast %63 : vector<8x128xf32> to vector<1x8x128xf32>
    tpu.vector_store %arg11[%c1, %c0_34, %c0_35], %66 {strides = array<i32>} : memref<2x8x128xf32, #tpu.memory_space<vmem>>, vector<1x8x128xf32>,
    return
  }
  func.func @transform_0(%arg0: i32) -> (i32, i32) {
    %c0_i32 = arith.constant 0 : i32
    %c0_i32_0 = arith.constant 0 : i32
    %c0_i32_1 = arith.constant 0 : i32
    return %c0_i32, %c0_i32_0 : i32, i32
  }
  func.func @transform_1(%arg0: i32) -> (i32, i32) {
    %c0_i32 = arith.constant 0 : i32
    %c0_i32_0 = arith.constant 0 : i32
    %c0_i32_1 = arith.constant 0 : i32
    return %c0_i32, %c0_i32_0 : i32, i32
  }
  func.func @transform_2(%arg0: i32) -> (i32, i32) {
    %c0_i32 = arith.constant 0 : i32
    %c0_i32_0 = arith.constant 0 : i32
    %c0_i32_1 = arith.constant 0 : i32
    return %c0_i32, %c0_i32_0 : i32, i32
  }
  func.func @transform_3(%arg0: i32) -> (i32, i32) {
    %c0_i32 = arith.constant 0 : i32
    %c0_i32_0 = arith.constant 0 : i32
    %c0_i32_1 = arith.constant 0 : i32
    return %c0_i32, %c0_i32_0 : i32, i32
  }
  func.func @transform_4(%arg0: i32) -> (i32, i32) {
    %c0_i32 = arith.constant 0 : i32
    %c0_i32_0 = arith.constant 0 : i32
    %c0_i32_1 = arith.constant 0 : i32
    return %c0_i32, %c0_i32_0 : i32, i32
  }
  func.func @transform_5(%arg0: i32) -> (i32, i32) {
    %c0_i32 = arith.constant 0 : i32
    %c0_i32_0 = arith.constant 0 : i32
    %c0_i32_1 = arith.constant 0 : i32
    return %c0_i32, %c0_i32_0 : i32, i32
  }
  func.func @transform_6(%arg0: i32) -> (i32, i32) {
    %c0_i32 = arith.constant 0 : i32
    %c0_i32_0 = arith.constant 0 : i32
    %c0_i32_1 = arith.constant 0 : i32
    return %c0_i32, %c0_i32_0 : i32, i32
  }
  func.func @transform_7(%arg0: i32) -> (i32, i32) {
    %c0_i32 = arith.constant 0 : i32
    %c0_i32_0 = arith.constant 0 : i32
    %c0_i32_1 = arith.constant 0 : i32
    return %c0_i32, %c0_i32_0 : i32, i32
  }
  func.func @transform_8(%arg0: i32) -> (i32, i32) {
    %c0_i32 = arith.constant 0 : i32
    %c0_i32_0 = arith.constant 0 : i32
    %c0_i32_1 = arith.constant 0 : i32
    return %c0_i32, %c0_i32_0 : i32, i32
  }
  func.func @transform_9(%arg0: i32) -> (i32, i32) {
    %c0_i32 = arith.constant 0 : i32
    %c0_i32_0 = arith.constant 0 : i32
    %c0_i32_1 = arith.constant 0 : i32
    return %c0_i32, %c0_i32_0 : i32, i32
  }
  func.func @transform_10(%arg0: i32) -> (i32, i32, i32) {
    %c0_i32 = arith.constant 0 : i32
    %c0_i32_0 = arith.constant 0 : i32
    %c0_i32_1 = arith.constant 0 : i32
    %c0_i32_2 = arith.constant 0 : i32
    return %c0_i32, %c0_i32_0, %c0_i32_1 : i32, i32, i32
  }
}

</mosaic_0001>

<bundles_post_ra>
// kernel: tpu_custom_call.1
= control target key start
LH: loop header
LB: loop body
LE: loop exit
PB: predicated region body
PF: predicated region fallthrough
CT: control target
= control target key end

     0   :  { %15 = vsyncpa [#allocation3], 0  ;;  %s1273_s0 = inlined_call_operand.hbm [shape: f32[16,32], index: 0, kind: input, shape index: {}]   ;;  %s1274_s1 = inlined_call_operand.hbm [shape: f32[16,32], index: 1, kind: input, shape index: {}]   ;;  %s1275_s2 = inlined_call_operand.hbm [shape: f32[16,32], index: 2, kind: input, shape index: {}]   ;;  %s1276_s3 = inlined_call_operand.vmem [shape: f32[2,8], index: 3, kind: input, shape index: {}]   ;;  %s1277_s4 = inlined_call_operand.hbm [shape: f32[32,128], index: 4, kind: input, shape index: {}]   ;;  %s1278_s5 = inlined_call_operand.vmem [shape: f32[1,128], index: 5, kind: input, shape index: {}]   ;;  %s1279_s6 = inlined_call_operand.hbm [shape: f32[32,128], index: 6, kind: input, shape index: {}]   ;;  %s1280_s7 = inlined_call_operand.vmem [shape: f32[1,128], index: 7, kind: input, shape index: {}]   ;;  %s1281_s8 = inlined_call_operand.hbm [shape: f32[32,128], index: 8, kind: input, shape index: {}]   ;;  %s1282_s9 = inlined_call_operand.vmem [shape: f32[1,128], index: 9, kind: input, shape index: {}]   ;;  %s1283_s10 = inlined_call_operand.hbm [shape: f32[2,8,128], index: 10, kind: output, shape index: {}]  }
   0x1   :  { %16 = vsyncpa [#allocation6], 0 }
   0x2   :  { %17 = vsyncpa [#allocation9], 0 }
   0x3   :  { %18 = vsyncpa [#allocation12], 0 }
   0x4   :  { %19 = vsyncpa [#allocation4], 0  ;;  %s1045_s13 = smov [#allocation5]   ;;  %s1046_s15 = smov [#allocation8]  }
   0x5   :  { %s37_s14 = sshll.u32 %s1045_s13, 4  ;;  %s63_s16 = sshll.u32 %s1046_s15, 4  ;;  %s38_s14 = int_to_ptr.vmem [resolvable:$true] %s37_s14  ;;  %s1111_s16 = int_to_ptr.vmem [resolvable:$true] %s63_s16 }
   0x6   :  { %s881_s19 = scalar_lea.hbm %s1274_s1, 256 }
   0x7   :  { %p882_p0 = scmp.ne.s32.totalorder %s1274_s1, %s881_s19  ;;  %p885_p1 = scmp.lt.u32.totalorder %s881_s19, %s1274_s1 }
   0x9   :  { %p887_p2 = pnand %p885_p1, %p882_p0 }
   0xb   :  { %890 = shalt.err (!%p887_p2)
}
   0xc   :  { %s891_s24 = scalar_lea.vmem %s38_s14, 256  ;;  %p896_p4 = scmp.lt.s32.totalorder %s38_s14, %s38_s14 }
   0xd   :  { %p892_p3 = scmp.ne.s32.totalorder %s38_s14, %s891_s24  ;;  %p897_p5 = scmp.lt.s32.totalorder %s891_s24, %s891_s24 }
   0xf   :  { %p898_p6 = por %p897_p5, %p896_p4 }
  0x11   :  { %p899_p7 = pnand %p898_p6, %p892_p3 }
  0x13   :  { %902 = shalt.err (!%p899_p7)
}
  0x14   :  { %s1047_s25 = smov 128   ;;  %s1048_s26 = smov 8  }
  0x15   :  { %43 = dma.hbm_to_vmem [thread:$0]  %s1274_s1, 256, %s38_s14, [#allocation6], %s1047_s25, %s1047_s25, %s1048_s26  }
  0x16   :  { %s903_s11 = scalar_lea.hbm %s1277_s4, 512 }
  0x17   :  { %p904_p8 = scmp.ne.s32.totalorder %s1277_s4, %s903_s11  ;;  %p907_p9 = scmp.lt.u32.totalorder %s903_s11, %s1277_s4 }
  0x19   :  { %p909_p10 = pnand %p907_p9, %p904_p8 }
  0x1b   :  { %912 = shalt.err (!%p909_p10)
}
  0x1c   :  { %s913_s18 = scalar_lea.vmem %s1111_s16, 512  ;;  %p918_p12 = scmp.lt.s32.totalorder %s1111_s16, %s1111_s16 }
  0x1d   :  { %p914_p11 = scmp.ne.s32.totalorder %s1111_s16, %s913_s18  ;;  %p919_p13 = scmp.lt.s32.totalorder %s913_s18, %s913_s18 }
  0x1f   :  { %p920_p0 = por %p919_p13, %p918_p12 }
  0x21   :  { %p921_p1 = pnand %p920_p0, %p914_p11 }
  0x23   :  { %924 = shalt.err (!%p921_p1)
}
  0x24   :  { %69 = dma.hbm_to_vmem [thread:$0]  %s1277_s4, 512, %s1111_s16, [#allocation9], %s1047_s25, %s1047_s25, %s1048_s26  }
  0x25   :  { %s1049_s19 = smov [#allocation2]   ;;  %s1050_s21 = smov [#allocation7]  }
  0x26   :  { %s25_s20 = sshll.u32 %s1049_s19, 4  ;;  %s49_s22 = sshll.u32 %s1050_s21, 4  ;;  %s26_s20 = int_to_ptr.vmem [resolvable:$true] %s25_s20  ;;  %s1148_s22 = int_to_ptr.vmem [resolvable:$true] %s49_s22 }
  0x27   :  { %s925_s27 = scalar_lea.hbm %s1273_s0, 256 }
  0x28   :  { %p926_p2 = scmp.ne.s32.totalorder %s1273_s0, %s925_s27  ;;  %p929_p3 = scmp.lt.u32.totalorder %s925_s27, %s1273_s0 }
  0x2a   :  { %p931_p4 = pnand %p929_p3, %p926_p2 }
  0x2c   :  { %934 = shalt.err (!%p931_p4)
}
  0x2d   :  { %s935_s4 = scalar_lea.vmem %s26_s20, 256  ;;  %p940_p6 = scmp.lt.s32.totalorder %s26_s20, %s26_s20 }
  0x2e   :  { %p936_p5 = scmp.ne.s32.totalorder %s26_s20, %s935_s4  ;;  %p941_p7 = scmp.lt.s32.totalorder %s935_s4, %s935_s4 }
  0x30   :  { %p942_p8 = por %p941_p7, %p940_p6 }
  0x32   :  { %p943_p9 = pnand %p942_p8, %p936_p5 }
  0x34   :  { %946 = shalt.err (!%p943_p9)
}
  0x35   :  { %31 = dma.hbm_to_vmem [thread:$0]  %s1273_s0, 256, %s26_s20, [#allocation3], %s1047_s25, %s1047_s25, %s1048_s26  }
  0x36   :  { %s947_s17 = scalar_lea.hbm %s1275_s2, 256 }
  0x37   :  { %p948_p10 = scmp.ne.s32.totalorder %s1275_s2, %s947_s17  ;;  %p951_p11 = scmp.lt.u32.totalorder %s947_s17, %s1275_s2 }
  0x39   :  { %p953_p12 = pnand %p951_p11, %p948_p10 }
  0x3b   :  { %956 = shalt.err (!%p953_p12)
}
  0x3c   :  { %s957_s21 = scalar_lea.vmem %s1148_s22, 256  ;;  %p962_p0 = scmp.lt.s32.totalorder %s1148_s22, %s1148_s22 }
  0x3d   :  { %p958_p13 = scmp.ne.s32.totalorder %s1148_s22, %s957_s21  ;;  %p963_p1 = scmp.lt.s32.totalorder %s957_s21, %s957_s21 }
  0x3f   :  { %p964_p2 = por %p963_p1, %p962_p0 }
  0x41   :  { %p965_p3 = pnand %p964_p2, %p958_p13 }
  0x43   :  { %968 = shalt.err (!%p965_p3)
}
  0x44   :  { %55 = dma.hbm_to_vmem [thread:$0]  %s1275_s2, 256, %s1148_s22, [#allocation6], %s1047_s25, %s1047_s25, %s1048_s26  }
  0x45   :  { %s1051_s23 = smov [#allocation10]   ;;  %s1052_s27 = smov [#allocation11]  }
  0x46   :  { %s77_s24 = sshll.u32 %s1051_s23, 4  ;;  %s91_s28 = sshll.u32 %s1052_s27, 4  ;;  %s78_s24 = int_to_ptr.vmem [resolvable:$true] %s77_s24  ;;  %s1185_s28 = int_to_ptr.vmem [resolvable:$true] %s91_s28 }
  0x47   :  { %s969_s11 = scalar_lea.hbm %s1279_s6, 512 }
  0x48   :  { %p970_p4 = scmp.ne.s32.totalorder %s1279_s6, %s969_s11  ;;  %p973_p5 = scmp.lt.u32.totalorder %s969_s11, %s1279_s6 }
  0x4a   :  { %p975_p6 = pnand %p973_p5, %p970_p4 }
  0x4c   :  { %978 = shalt.err (!%p975_p6)
}
  0x4d   :  { %s979_s2 = scalar_lea.vmem %s78_s24, 512  ;;  %p984_p8 = scmp.lt.s32.totalorder %s78_s24, %s78_s24 }
  0x4e   :  { %p980_p7 = scmp.ne.s32.totalorder %s78_s24, %s979_s2  ;;  %p985_p9 = scmp.lt.s32.totalorder %s979_s2, %s979_s2 }
  0x50   :  { %p986_p10 = por %p985_p9, %p984_p8 }
  0x52   :  { %p987_p11 = pnand %p986_p10, %p980_p7 }
  0x54   :  { %990 = shalt.err (!%p987_p11)
}
  0x55   :  { %83 = dma.hbm_to_vmem [thread:$0]  %s1279_s6, 512, %s78_s24, [#allocation9], %s1047_s25, %s1047_s25, %s1048_s26  }
  0x56   :  { %s991_s1 = scalar_lea.hbm %s1281_s8, 512 }
  0x57   :  { %p992_p12 = scmp.ne.s32.totalorder %s1281_s8, %s991_s1  ;;  %p995_p13 = scmp.lt.u32.totalorder %s991_s1, %s1281_s8 }
  0x59   :  { %p997_p0 = pnand %p995_p13, %p992_p12 }
  0x5b   :  { %1000 = shalt.err (!%p997_p0)
}
  0x5c   :  { %s1001_s20 = scalar_lea.vmem %s1185_s28, 512  ;;  %p1006_p2 = scmp.lt.s32.totalorder %s1185_s28, %s1185_s28 }
  0x5d   :  { %p1002_p1 = scmp.ne.s32.totalorder %s1185_s28, %s1001_s20  ;;  %p1007_p3 = scmp.lt.s32.totalorder %s1001_s20, %s1001_s20 }
  0x5f   :  { %p1008_p4 = por %p1007_p3, %p1006_p2 }
  0x61   :  { %p1009_p5 = pnand %p1008_p4, %p1002_p1 }
  0x63   :  { %1012 = shalt.err (!%p1009_p5)
}
  0x64   :  { %97 = dma.hbm_to_vmem [thread:$0]  %s1281_s8, 512, %s1185_s28, [#allocation12], %s1047_s25, %s1047_s25, %s1048_s26  }
  0x65   :  { %1035 = dma.done.wait [#allocation3], 256  }
  0x66   :  { %1036 = vsyncadd [#allocation3], 4294967040 }
  0x67   :  { %1037 = dma.done.wait [#allocation6], 512  }
  0x68   :  { %1038 = vsyncadd [#allocation6], 4294966784 }
  0x69   :  { %1039 = dma.done.wait [#allocation9], 1024  }
  0x6a   :  { %1040 = vsyncadd [#allocation9], 4294966272 }
  0x6b   :  { %1041 = dma.done.wait [#allocation12], 512  }
  0x6c   :  { %1042 = vsyncadd [#allocation12], 4294966784  ;;  %v215_v0 = vld [vmem:[#allocation10] sm:$0xff]  ;;  %v216_v1 = vld [vmem:[#allocation10 + $0x8] sm:$0xff]  ;;  %vm131_vm0 = vcmask 261120   ;;  %v1053_v24 = vmov 0.0   ;;  %v474_v40 = vlaneseq }
  0x6d   :  { %v120_v2 = vld [vmem:[#allocation8] sm:$0xff]  ;;  %v846_v3 = vpack.c.bf16 %v216_v1, %v215_v0  ;;  %v121_v4 = vld [vmem:[#allocation8 + $0x8] sm:$0xff]  ;;  %v217_v5 = vld [vmem:[#allocation10 + $0x10] sm:$0xff]  ;;  %vm1054_vm1 = vmmov 0   ;;  %vm479_vm2 = vcmask 64512  }
  0x6e   :  { %v218_v6 = vld [vmem:[#allocation10 + $0x18] sm:$0xff]  ;;  %v838_v7 = vpack.c.bf16 %v121_v4, %v120_v2  ;;  %v122_v9 = vld [vmem:[#allocation8 + $0x10] sm:$0xff]  ;;  %v213_v11 = vld [vmem:[#allocation5] sm:$0xff]  ;;  %v475_v41 = vshrl.u32 %v474_v40, 7 }
  0x6f   :  { %v850_v8 = vpack.c.bf16 %v218_v6, %v217_v5  ;;  %v123_v10 = vld [vmem:[#allocation8 + $0x18] sm:$0xff]  ;;  %847 = vmatprep.subr.bf16.mxu1 %v846_v3  ;;  %804 = vmatprep.mubr.msk.f32.mxu1 %vm131_vm0, %v213_v11  ;;  %v118_v13 = vld [vmem:[#allocation2] sm:$0xff]  ;;  %v309_v14 = vld [vmem:[#allocation11] sm:$0xff] }
  0x70   :  { %v842_v12 = vpack.c.bf16 %v123_v10, %v122_v9  ;;  %849 = vmatpush3.bf16.msra.mxu1 %v846_v3  ;;  %839 = vmatprep.subr.bf16.mxu0 %v838_v7  ;;  %v310_v15 = vld [vmem:[#allocation11 + $0x8] sm:$0xff]  ;;  %v311_v17 = vld [vmem:[#allocation11 + $0x10] sm:$0xff]  ;;  %v312_v18 = vld [vmem:[#allocation11 + $0x18] sm:$0xff]  ;;  %v476_v42 = vsub.s32 0, %v475_v41  ;;  %v639_v45 = vsub.s32 1, %v475_v41 }
  0x71   :  { %841 = vmatpush3.bf16.msra.mxu0 %v838_v7  ;;  %851 = vmatprep.subr.bf16.mxu1 %v850_v8  ;;  %v854_v16 = vpack.c.bf16 %v310_v15, %v309_v14  ;;  %v214_v19 = vld [vmem:[#allocation5 + $0x8] sm:$0xff]  ;;  %v119_v20 = vld [vmem:[#allocation2 + $0x8] sm:$0xff]  ;;  %v858_v21 = vpack.c.bf16 %v312_v18, %v311_v17  ;;  %v307_v22 = vld [vmem:[#allocation7] sm:$0xff] }
  0x72   :  { %843 = vmatprep.subr.bf16.mxu0 %v842_v12  ;;  %793 = vmatprep.mubr.msk.f32.mxu0 %vm131_vm0, %v118_v13  ;;  %v308_v23 = vld [vmem:[#allocation7 + $0x8] sm:$0xff]  ;;  %v751_v25 = vld [vmem:[%s1280_s7] ss:$0 sm:$0xff] }
  0x73   :  { %v748_v26 = vld [vmem:[%s1278_s5] ss:$0 sm:$0xff] }
  0x74   :  { %853 = vmatpush3.bf16.msra.mxu1 %v850_v8  ;;  %v754_v35 = vld [vmem:[%s1282_s9] ss:$0 sm:$0xff] }
  0x75   :  { %845 = vmatpush3.bf16.msra.mxu0 %v842_v12  ;;  %818 = vmatprep.subr.mxu1 %v1053_v24  ;;  %v401_v43 = vld [vmem:[%s1276_s3] sm:$0x3]  ;;  %s1055_s3 = smov [#allocation13]  }
  0x76   :  { %855 = vmatprep.subr.bf16.mxu0 %v854_v16  ;;  %v477_v51 = vrot.slane %v401_v43, %v476_v42  ;;  %v640_v54 = vrot.slane %v401_v43, %v639_v45  ;;  %s733_s9 = sshll.u32 %s1055_s3, 4  ;;  %s734_s9 = int_to_ptr.vmem [resolvable:$true] %s733_s9 }
  0x77   :  { %805 = vmatmul.mubr.msk.f32.vlgmr.msra.gmra.mrb[0].mxu1 %vm131_vm0, %v214_v19  ;;  %s1013_s11 = scalar_lea.vmem %s734_s9, 256  ;;  %p1018_p7 = scmp.lt.s32.totalorder %s734_s9, %s734_s9 }
  0x78   :  { %794 = vmatmul.mubr.msk.f32.vlgmr.msra.gmra.mrb[0].mxu0 %vm131_vm0, %v119_v20  ;;  %820 = vmatprep.mubr.msk.f32.mxu1 %vm1054_vm1, %v1053_v24  ;;  %p1014_p6 = scmp.ne.s32.totalorder %s734_s9, %s1013_s11  ;;  %p1019_p8 = scmp.lt.s32.totalorder %s1013_s11, %s1013_s11 }
  0x79   :  { %857 = vmatpush3.bf16.msra.mxu0 %v854_v16  ;;  %815 = vmatprep.mubr.msk.f32.mxu0 %vm131_vm0, %v307_v22 }
  0x7a   :  { %859 = vmatprep.subr.bf16.mxu0 %v858_v21  ;;  %p1020_p9 = por %p1019_p8, %p1018_p7 }
  0x7c   :  { %p1021_p10 = pnand %p1020_p9, %p1014_p6 }
  0x7d   :  { %861 = vmatpush3.bf16.msra.mxu0 %v858_v21 }
  0x7e   :  { %828 = vmatprep.subr.mxu0 %v1053_v24 }
  0x80   :  { %816 = vmatmul.mubr.msk.f32.vlgmr.msra.gmra.mrb[2].mxu0 %vm131_vm0, %v308_v23 }
  0x81   :  { %830 = vmatprep.mubr.msk.f32.mxu0 %vm1054_vm1, %v1053_v24 }
 0x14a   :  { %v806_v27 = vpop.f32.mrb[0].mxu1 }
 0x14b   :  { %v304_v28 = vadd.f32 %v806_v27, %v751_v25  ;;  %v298_v29 = vpop.f32.mrb[1].mxu1  ;;  %v795_v30 = vpop.f32.mrb[0].mxu0 }
 0x14c   :  { %v299_v31 = vadd.f32 %v751_v25, %v298_v29  ;;  %v210_v32 = vadd.f32 %v795_v30, %v748_v26  ;;  %v204_v33 = vpop.f32.mrb[1].mxu0 }
 0x14d   :  { %829 = vmatpush3.xpose.msra.mxu0 %v304_v28  ;;  %v205_v34 = vadd.f32 %v748_v26, %v204_v33 }
 0x14e   :  { %819 = vmatpush3.xpose.msra.mxu1 %v299_v31 }
 0x14f   :  { %823 = vmatprep.subr.mxu1 %v1053_v24 }
 0x150   :  { %831 = vmatmul.mubr.f32.vlgmr.msra.gmra.mrb[4].mxu0 %v210_v32 }
 0x151   :  { %821 = vmatmul.mubr.f32.vlgmr.msra.gmra.mrb[2].mxu1 %v205_v34 }
 0x152   :  { %825 = vmatprep.mubr.msk.f32.mxu1 %vm1054_vm1, %v1053_v24 }
 0x153   :  { %v817_v36 = vpop.f32.mrb[2].mxu0 }
 0x154   :  { %v398_v37 = vadd.f32 %v817_v36, %v754_v35  ;;  %v392_v38 = vpop.f32.mrb[3].mxu0 }
 0x155   :  { %v393_v39 = vadd.f32 %v754_v35, %v392_v38 }
 0x157   :  { %824 = vmatpush3.msra.mxu1 %v393_v39 }
 0x158   :  { %833 = vmatprep.subr.mxu1 %v1053_v24 }
 0x223   :  { %v631_v44 = vpop.f32.mrb[4].mxu0 }
 0x224   :  { %v635_v46 = vmul.f32 0.17677669, %v631_v44  ;;  %v468_v47 = vpop.f32.mrb[2].mxu1  ;;  %v832_v48 = vpop.f32.mrb[5].mxu0 }
 0x225   :  { %v472_v49 = vmul.f32 0.17677669, %v468_v47  ;;  %v822_v50 = vpop.f32.mrb[3].mxu1 }
 0x226   :  { %v636_v52 = vfloor.f32 %v635_v46 }
 0x227   :  { %v473_v53 = vfloor.f32 %v472_v49 }
 0x228   :  { %v641_v57 = vadd.f32 %v640_v54, %v636_v52 }
 0x229   :  { %v478_v55 = vadd.f32 %v477_v51, %v473_v53 }
 0x22a   :  { %v642_v58 = vsel %vm479_vm2, %v641_v57, -inf }
 0x22b   :  { %v480_v56 = vsel %vm479_vm2, %v478_v55, -inf }
 0x22c   :  { %481 = vmax.xlane.f32.xlu0 %v480_v56 }
 0x230   :  { %643 = vmax.xlane.f32.xlu0 %v642_v58 }
 0x2b9   :  { %v482_v59 = vpop.xlane.xlu0 %481 }
 0x2ba   :  { %v483_v60 = vsub.f32 %v478_v55, %v482_v59 }
 0x2bc   :  { %v484_v61 = vmul.f32 1.442695, %v483_v60 }
 0x2bd   :  { %v644_v62 = vpop.xlane.xlu0 %643 }
 0x2be   :  { %873 = vpow2.f32 %v484_v61  ;;  %v645_v63 = vsub.f32 %v641_v57, %v644_v62 }
 0x2c0   :  { %v646_v0 = vmul.f32 1.442695, %v645_v63 }
 0x2c2   :  { %875 = vpow2.f32 %v646_v0 }
 0x2c8   :  { %v874_v1 = vpop.eup %873 }
 0x2c9   :  { %v486_v2 = vsel %vm479_vm2, %v874_v1, 0.0 }
 0x2ca   :  { %487 = vadd.xlane.f32.xlu1 %v486_v2 }
 0x2cc   :  { %v876_v3 = vpop.eup %875 }
 0x2cd   :  { %v648_v4 = vsel %vm479_vm2, %v876_v3, 0.0 }
 0x2ce   :  { %649 = vadd.xlane.f32.xlu1 %v648_v4 }
 0x357   :  { %v488_v5 = vpop.xlane.xlu1 %487 }
 0x358   :  { %877 = vrcp.f32 %v488_v5 }
 0x35b   :  { %v650_v6 = vpop.xlane.xlu1 %649 }
 0x35c   :  { %879 = vrcp.f32 %v650_v6 }
 0x362   :  { %v878_v7 = vpop.eup %877 }
 0x363   :  { %v490_v8 = vmul.f32 %v878_v7, %v874_v1 }
 0x365   :  { %826 = vmatmul.mubr.msk.f32.vlgmr.msra.gmra.mrb[4].mxu1 %vm479_vm2, %v490_v8 }
 0x366   :  { %v880_v9 = vpop.eup %879  ;;  %834 = vmatpush3.msra.mxu1 %v398_v37  ;;  %835 = vmatprep.mubr.msk.f32.mxu1 %vm1054_vm1, %v1053_v24 }
 0x367   :  { %v652_v10 = vmul.f32 %v880_v9, %v876_v3 }
 0x369   :  { %836 = vmatmul.mubr.msk.f32.vlgmr.msra.gmra.mrb[6].mxu1 %vm479_vm2, %v652_v10 }
 0x438   :  { %v560_v11 = vpop.f32.mrb[4].mxu1 }
 0x439   :  { %564 = vst [vmem:[#allocation13] sm:$0xff] %v560_v11  ;;  %v827_v12 = vpop.f32.mrb[5].mxu1 }
 0x43c   :  { %v722_v13 = vpop.f32.mrb[6].mxu1 }
 0x43d   :  { %727 = vst [vmem:[#allocation13 + $0x8] sm:$0xff] %v722_v13  ;;  %v837_v14 = vpop.f32.mrb[7].mxu1 }
 0x43e   :  { %1024 = shalt.err (!%p1021_p10)
}
 0x43f   :  { %s1025_s12 = scalar_lea.hbm %s1283_s10, 256 }
 0x440   :  { %p1026_p11 = scmp.ne.s32.totalorder %s1283_s10, %s1025_s12  ;;  %p1029_p12 = scmp.lt.u32.totalorder %s1025_s12, %s1283_s10 }
 0x442   :  { %p1031_p13 = pnand %p1029_p12, %p1026_p11 }
 0x444   :  { %1034 = shalt.err (!%p1031_p13)
}
 0x445   :  { %739 = dma.vmem_to_hbm [thread:$0]  %s734_s9, 256, %s1283_s10, [#allocation4], %s1047_s25, %s1047_s25, %s1048_s26  }
 0x446   :  { %1043 = dma.done.wait [#allocation4], 256  }
 0x447   :  { %1044 = vsyncadd [#allocation4], 4294967040 }
 0x448   :  { %743 = vsyncpa [#allocation3], 1 }
 0x449   :  { %744 = vsyncpa [#allocation6], 1 }
 0x44a   :  { %745 = vsyncpa [#allocation9], 1 }
 0x44b   :  { %746 = vsyncpa [#allocation12], 1 }
 0x44c   :  { %747 = vsyncpa [#allocation4], 1 }

</bundles_post_ra>
